<compile_context>
chip_gen: v5e
topology: v5e:2x2
jax: 0.10.0
libtpu: 0.0.40
codegen_flags: <defaults>
</compile_context>

<pallas_src>
import jax
import jax.numpy as jnp
import numpy as np
from jax import lax
from jax.experimental import pallas as pl
from jax.experimental.pallas import tpu as pltpu


def _round_up(n, m):
    return ((n + m - 1) // m) * m


def _sum_ptr_gen_kernel(x_ref, w_ref, b_ref, ids_ref, attn_ref, mask_ref,
                        out_probs_ref, gen_scores_ref):
    tb = x_ref.shape[0]
    v_pad = w_ref.shape[1]
    t_len = ids_ref.shape[1]

    # gen = gen_lin(x)[:, out_map]: the out_map gather is pre-folded into
    # W'/b' in the wrapper; padded vocab columns carry a -1e30 bias so they
    # vanish in the softmax without any in-kernel lane mask.
    gen = jnp.dot(x_ref[...], w_ref[...],
                  preferred_element_type=jnp.float32) + b_ref[...]    # (TB, V_pad) f32

    # gen_scores output: additive action-mask bias built in-kernel from the
    # raw int8 mask (exactly torch's `gen + (-1e6) * mask.float()`).
    gen_scores_ref[...] = gen + mask_ref[...].astype(jnp.float32) * jnp.float32(-1e6)

    # ptr_scores: scatter-add of attention mass over mapped ctx ids, built
    # directly in action space and accumulated straight into gen.  T is small
    # and static, so a fully unrolled loop keeps the live set at one slab.
    # TODO(synk): if T grows large, cap the unroll with lax.fori_loop chunks.
    lane = lax.broadcasted_iota(jnp.int32, (tb, v_pad), 1)
    acc = gen
    for t in range(t_len):
        ids_t = ids_ref[:, t:t + 1]                                    # (TB, 1) int32
        attn_t = attn_ref[:, t:t + 1]                                  # (TB, 1) f32
        acc = acc + jnp.where(ids_t == lane, attn_t, jnp.float32(0.0))

    # softmax(out_scores, -1): EUP approx reciprocal + one Newton refinement
    # keeps rows normalized to ~f32 precision with the divide off the VALU.
    m = jnp.max(acc, axis=-1, keepdims=True)
    e = jnp.exp(acc - m)
    denom = jnp.sum(e, axis=-1, keepdims=True)
    r = pl.reciprocal(denom, approx=True)
    r = r * (2.0 - denom * r)
    out_probs_ref[...] = e * r


def _pick_tile_b(batch, h, v_pad):
    """Largest batch tile fitting a conservative VMEM budget on every chip
    (v5e/v6e: 128 MiB physical, v7x: 64 MiB), then shrunk so the parallel
    grid has >=2 steps when possible (keeps both v7x TensorCores busy).
    Kept a multiple of 32 so the int8 mask tile is natively sublane-aligned."""
    per_row = (2 * 2 * 4 * v_pad        # two f32 output streams, double-buffered
               + 2 * 1 * v_pad          # int8 mask, double-buffered
               + 3 * 4 * v_pad          # live f32 temporaries in the body
               + 2 * 2 * h + 256)       # bf16 x + ids/attn slivers
    resident = 2 * 2 * h * v_pad + 2 * 4 * v_pad   # W' (bf16) + b' (f32), 2 bufs
    budget = 12 * 1024 * 1024
    tb = 512
    while tb > 32 and tb * per_row + resident > budget:
        tb //= 2
    tb = max(32, min(tb, _round_up(batch, 32)))
    while tb > 32 and _round_up(batch, tb) // tb < 2:
        tb //= 2
    return tb


def sum_ptr_gen_forward(x, ctx_ids, attn_scores, actionmask,
                        w, b, out_map, inp_to_act):
    B, H = x.shape
    V_out = w.shape[1]
    T = ctx_ids.shape[1]

    # ---- one-time (constant-foldable) preprocessing in the wrapper ----------
    V_pad = _round_up(V_out, 128)
    # Fold the out_map gather into weights / bias; kill padded vocab columns
    # by baking a -1e30 bias into b' (so the kernel needs no lane mask).
    w_perm = jnp.pad(w[:, out_map].astype(jnp.bfloat16),
                     ((0, 0), (0, V_pad - V_out)))                     # (H, V_pad) bf16
    b_perm = jnp.pad(b[out_map].astype(jnp.float32).reshape(1, V_out),
                     ((0, 0), (0, V_pad - V_out)),
                     constant_values=-1e30)                            # (1, V_pad) f32
    # Map ctx ids straight into action space (scatter target of _inp_to_act).
    mapped_ctx = inp_to_act[ctx_ids].astype(jnp.int32)                 # (B, T)

    # ---- lane-dense / sublane-aligned padding + batch tile ------------------
    TB = _pick_tile_b(B, H, V_pad)
    B_pad = _round_up(B, TB)

    def pad2(a, rows, cols):
        return jnp.pad(a, ((0, rows - a.shape[0]), (0, cols - a.shape[1])))

    x_p = pad2(x.astype(jnp.bfloat16), B_pad, H)                       # bf16 once
    ids_p = pad2(mapped_ctx, B_pad, T)
    attn_p = pad2(attn_scores.astype(jnp.float32), B_pad, T)
    mask_p = pad2(actionmask.astype(jnp.int8), B_pad, V_pad)           # raw int8 mask

    grid = (B_pad // TB,)

    out_probs, gen_scores = pl.pallas_call(
        _sum_ptr_gen_kernel,
        out_shape=(jax.ShapeDtypeStruct((B_pad, V_pad), jnp.float32),
                   jax.ShapeDtypeStruct((B_pad, V_pad), jnp.float32)),
        grid=grid,
        in_specs=[
            pl.BlockSpec((TB, H), lambda i: (i, 0)),        # x tile (bf16)
            # TODO(synk): single-buffer the resident W'/b' blocks
            # (pipeline_mode=pl.Buffered(1)) to reclaim one weight copy of
            # VMEM on v7x once that path is verified on this jax version.
            pl.BlockSpec((H, V_pad), lambda i: (0, 0)),     # W' (resident, bf16)
            pl.BlockSpec((1, V_pad), lambda i: (0, 0)),     # b' (resident, f32)
            pl.BlockSpec((TB, T), lambda i: (i, 0)),        # mapped ctx ids (int32)
            pl.BlockSpec((TB, T), lambda i: (i, 0)),        # attention scores (f32)
            pl.BlockSpec((TB, V_pad), lambda i: (i, 0)),    # action mask (int8)
        ],
        out_specs=(pl.BlockSpec((TB, V_pad), lambda i: (i, 0)),
                   pl.BlockSpec((TB, V_pad), lambda i: (i, 0))),
        compiler_params=pltpu.CompilerParams(
            dimension_semantics=("parallel",),              # megacore on v7x
            vmem_limit_bytes=32 * 1024 * 1024),
    )(x_p, w_perm, b_perm, ids_p, attn_p, mask_p)

    # TODO(synk): emit out_probs / gen_scores in bf16 if downstream tolerates
    # it (the two f32 output streams are the largest remaining HBM traffic).
    # PyTorch forward returns (out_probs, None, gen_scores, attn_scores).
    return out_probs[:B, :V_out], None, gen_scores[:B, :V_out], attn_scores


def _reference(x, ctx_ids, attn, amask, w, b, out_map, inp_to_act):
    """Plain-JAX mirror of the torch forward, for correctness checking."""
    B = x.shape[0]
    V_out = w.shape[1]
    V_in = inp_to_act.shape[0]
    gen = x @ w + b[None, :]
    gen = gen[:, out_map]
    inpdist = jnp.zeros((B, V_in), jnp.float32).at[
        jnp.arange(B)[:, None], ctx_ids].add(attn)
    ptr = jnp.zeros((B, V_out), jnp.float32).at[:, inp_to_act].set(inpdist)
    out_scores = gen + ptr
    gen_masked = gen + (-1e6) * amask.astype(jnp.float32)
    return jax.nn.softmax(out_scores, axis=-1), gen_masked


if __name__ == "__main__":
    B, H, V_OUT, V_IN, T = 2, 32, 24, 16, 8
    ks = jax.random.split(jax.random.PRNGKey(0), 7)

    x = jax.random.normal(ks[0], (B, H), jnp.float32)
    w = jax.random.normal(ks[1], (H, V_OUT), jnp.float32) * 0.1   # gen_lin.weight.T
    b = jax.random.normal(ks[2], (V_OUT,), jnp.float32) * 0.1     # gen_lin.bias
    ctx_ids = jax.random.randint(ks[3], (B, T), 0, V_IN, dtype=jnp.int32)
    attn_scores = jax.nn.softmax(
        jax.random.normal(ks[4], (B, T), jnp.float32), axis=-1)
    actionmask = jax.random.randint(ks[5], (B, V_OUT), 0, 2, dtype=jnp.int32)

    # out_map buffer: identity with rare token ids {5, 11} remapped to id 1
    out_map = jnp.arange(V_OUT, dtype=jnp.int32).at[jnp.array([5, 11])].set(1)
    # _inp_to_act buffer: injective map from input-vocab ids to action ids
    inp_to_act = jax.random.permutation(
        ks[6], jnp.arange(V_OUT, dtype=jnp.int32))[:V_IN]

    out_probs, _, gen_scores, attn_out = sum_ptr_gen_forward(
        x, ctx_ids, attn_scores, actionmask, w, b, out_map, inp_to_act)
    jax.block_until_ready((out_probs, gen_scores, attn_out))

    ref_probs, ref_gen = _reference(
        x, ctx_ids, attn_scores, actionmask, w, b, out_map, inp_to_act)
    # bf16 MXU path -> slightly looser tolerance than pure-f32.
    assert np.allclose(np.asarray(out_probs), np.asarray(ref_probs),
                       atol=2e-2, rtol=2e-2)
    assert np.allclose(np.asarray(gen_scores), np.asarray(ref_gen),
                       atol=2e-2, rtol=2e-2)
    assert np.allclose(np.asarray(attn_out), np.asarray(attn_scores))
    # rows are ~exactly normalized (Newton-refined reciprocal)
    assert np.allclose(np.asarray(out_probs).sum(-1), 1.0, atol=1e-3)

    print("KERNEL_OK")
</pallas_src>

<mosaic_0001>
module attributes {stable_mosaic.version = 11 : i64} {
  func.func @_sum_ptr_gen_kernel(%arg0: i32, %arg1: memref<32x32xbf16, #tpu.memory_space<vmem>>, %arg2: memref<32x128xbf16, #tpu.memory_space<vmem>>, %arg3: memref<1x128xf32, #tpu.memory_space<vmem>>, %arg4: memref<32x8xi32, #tpu.memory_space<vmem>>, %arg5: memref<32x8xf32, #tpu.memory_space<vmem>>, %arg6: memref<32x128xi8, #tpu.memory_space<vmem>>, %arg7: memref<32x128xf32, #tpu.memory_space<vmem>>, %arg8: memref<32x128xf32, #tpu.memory_space<vmem>>) attributes {dimension_semantics = [#tpu.dimension_semantics<parallel>], iteration_bounds = array<i64: 1>, scalar_prefetch = 0 : i64, scratch_operands = 0 : i64, tpu.core_type = #tpu.core_type<tc>, window_params = [{transform_indices = @transform_0, window_bounds = array<i64: 32, 32>}, {pipeline_mode = #tpu.pipeline_mode<synchronous>, transform_indices = @transform_1, window_bounds = array<i64: 32, 128>}, {pipeline_mode = #tpu.pipeline_mode<synchronous>, transform_indices = @transform_2, window_bounds = array<i64: 1, 128>}, {transform_indices = @transform_3, window_bounds = array<i64: 32, 8>}, {transform_indices = @transform_4, window_bounds = array<i64: 32, 8>}, {transform_indices = @transform_5, window_bounds = array<i64: 32, 128>}, {transform_indices = @transform_6, window_bounds = array<i64: 32, 128>}, {transform_indices = @transform_7, window_bounds = array<i64: 32, 128>}]} {
    %c0 = arith.constant 0 : index
    %c0_0 = arith.constant 0 : index
    %0 = vector.load %arg1[%c0, %c0_0] : memref<32x32xbf16, #tpu.memory_space<vmem>>, vector<32x32xbf16>
    %c0_1 = arith.constant 0 : index
    %c0_2 = arith.constant 0 : index
    %1 = vector.load %arg2[%c0_1, %c0_2] : memref<32x128xbf16, #tpu.memory_space<vmem>>, vector<32x128xbf16>
    %cst = arith.constant dense<0.000000e+00> : vector<32x128xf32>
    %2 = tpu.matmul %0, %1, %cst {dimension_numbers = #tpu.dot_dimension_numbers<[1], [0], [0], [1], [0, 0, 1, 1], [], []>} : vector<32x32xbf16>, vector<32x128xbf16>, vector<32x128xf32> -> vector<32x128xf32>
    %c0_3 = arith.constant 0 : index
    %c0_4 = arith.constant 0 : index
    %3 = vector.load %arg3[%c0_3, %c0_4] : memref<1x128xf32, #tpu.memory_space<vmem>>, vector<1x128xf32>
    %4 = vector.broadcast %3 : vector<1x128xf32> to vector<32x128xf32>
    %5 = arith.addf %2, %4 : vector<32x128xf32>
    %c0_5 = arith.constant 0 : index
    %c0_6 = arith.constant 0 : index
    %6 = vector.load %arg6[%c0_5, %c0_6] : memref<32x128xi8, #tpu.memory_space<vmem>>, vector<32x128xi8>
    %7 = arith.sitofp %6 : vector<32x128xi8> to vector<32x128xf32>
    %cst_7 = arith.constant -1.000000e+06 : f32
    %8 = vector.broadcast %cst_7 : f32 to vector<32x128xf32>
    %9 = arith.mulf %7, %8 : vector<32x128xf32>
    %10 = arith.addf %5, %9 : vector<32x128xf32>
    %c0_8 = arith.constant 0 : index
    %c0_9 = arith.constant 0 : index
    %11 = vector.load %arg8[%c0_8, %c0_9] : memref<32x128xf32, #tpu.memory_space<vmem>>, vector<32x128xf32>
    tpu.vector_store %arg8[%c0_8, %c0_9], %10 {strides = array<i32>} : memref<32x128xf32, #tpu.memory_space<vmem>>, vector<32x128xf32>,
    %12 = tpu.iota {dimensions = array<i32: 1>} : vector<32x128xi32>
    %c0_10 = arith.constant 0 : index
    %c0_11 = arith.constant 0 : index
    %13 = vector.load %arg4[%c0_10, %c0_11] : memref<32x8xi32, #tpu.memory_space<vmem>>, vector<32x1xi32>
    %c0_12 = arith.constant 0 : index
    %c0_13 = arith.constant 0 : index
    %14 = vector.load %arg5[%c0_12, %c0_13] : memref<32x8xf32, #tpu.memory_space<vmem>>, vector<32x1xf32>
    %15 = vector.broadcast %13 : vector<32x1xi32> to vector<32x128xi32>
    %16 = arith.cmpi eq, %15, %12 : vector<32x128xi32>
    %cst_14 = arith.constant 0.000000e+00 : f32
    %17 = vector.shape_cast %14 : vector<32x1xf32> to vector<32x1xf32>
    %18 = vector.broadcast %17 : vector<32x1xf32> to vector<32x128xf32>
    %19 = vector.broadcast %cst_14 : f32 to vector<32x128xf32>
    %20 = arith.select %16, %18, %19 : vector<32x128xi1>, vector<32x128xf32>
    %21 = arith.addf %5, %20 : vector<32x128xf32>
    %c0_15 = arith.constant 0 : index
    %c1 = arith.constant 1 : index
    %22 = vector.load %arg4[%c0_15, %c1] : memref<32x8xi32, #tpu.memory_space<vmem>>, vector<32x1xi32>
    %c0_16 = arith.constant 0 : index
    %c1_17 = arith.constant 1 : index
    %23 = vector.load %arg5[%c0_16, %c1_17] : memref<32x8xf32, #tpu.memory_space<vmem>>, vector<32x1xf32>
    %24 = vector.broadcast %22 : vector<32x1xi32> to vector<32x128xi32>
    %25 = arith.cmpi eq, %24, %12 : vector<32x128xi32>
    %cst_18 = arith.constant 0.000000e+00 : f32
    %26 = vector.shape_cast %23 : vector<32x1xf32> to vector<32x1xf32>
    %27 = vector.broadcast %26 : vector<32x1xf32> to vector<32x128xf32>
    %28 = vector.broadcast %cst_18 : f32 to vector<32x128xf32>
    %29 = arith.select %25, %27, %28 : vector<32x128xi1>, vector<32x128xf32>
    %30 = arith.addf %21, %29 : vector<32x128xf32>
    %c0_19 = arith.constant 0 : index
    %c2 = arith.constant 2 : index
    %31 = vector.load %arg4[%c0_19, %c2] : memref<32x8xi32, #tpu.memory_space<vmem>>, vector<32x1xi32>
    %c0_20 = arith.constant 0 : index
    %c2_21 = arith.constant 2 : index
    %32 = vector.load %arg5[%c0_20, %c2_21] : memref<32x8xf32, #tpu.memory_space<vmem>>, vector<32x1xf32>
    %33 = vector.broadcast %31 : vector<32x1xi32> to vector<32x128xi32>
    %34 = arith.cmpi eq, %33, %12 : vector<32x128xi32>
    %cst_22 = arith.constant 0.000000e+00 : f32
    %35 = vector.shape_cast %32 : vector<32x1xf32> to vector<32x1xf32>
    %36 = vector.broadcast %35 : vector<32x1xf32> to vector<32x128xf32>
    %37 = vector.broadcast %cst_22 : f32 to vector<32x128xf32>
    %38 = arith.select %34, %36, %37 : vector<32x128xi1>, vector<32x128xf32>
    %39 = arith.addf %30, %38 : vector<32x128xf32>
    %c0_23 = arith.constant 0 : index
    %c3 = arith.constant 3 : index
    %40 = vector.load %arg4[%c0_23, %c3] : memref<32x8xi32, #tpu.memory_space<vmem>>, vector<32x1xi32>
    %c0_24 = arith.constant 0 : index
    %c3_25 = arith.constant 3 : index
    %41 = vector.load %arg5[%c0_24, %c3_25] : memref<32x8xf32, #tpu.memory_space<vmem>>, vector<32x1xf32>
    %42 = vector.broadcast %40 : vector<32x1xi32> to vector<32x128xi32>
    %43 = arith.cmpi eq, %42, %12 : vector<32x128xi32>
    %cst_26 = arith.constant 0.000000e+00 : f32
    %44 = vector.shape_cast %41 : vector<32x1xf32> to vector<32x1xf32>
    %45 = vector.broadcast %44 : vector<32x1xf32> to vector<32x128xf32>
    %46 = vector.broadcast %cst_26 : f32 to vector<32x128xf32>
    %47 = arith.select %43, %45, %46 : vector<32x128xi1>, vector<32x128xf32>
    %48 = arith.addf %39, %47 : vector<32x128xf32>
    %c0_27 = arith.constant 0 : index
    %c4 = arith.constant 4 : index
    %49 = vector.load %arg4[%c0_27, %c4] : memref<32x8xi32, #tpu.memory_space<vmem>>, vector<32x1xi32>
    %c0_28 = arith.constant 0 : index
    %c4_29 = arith.constant 4 : index
    %50 = vector.load %arg5[%c0_28, %c4_29] : memref<32x8xf32, #tpu.memory_space<vmem>>, vector<32x1xf32>
    %51 = vector.broadcast %49 : vector<32x1xi32> to vector<32x128xi32>
    %52 = arith.cmpi eq, %51, %12 : vector<32x128xi32>
    %cst_30 = arith.constant 0.000000e+00 : f32
    %53 = vector.shape_cast %50 : vector<32x1xf32> to vector<32x1xf32>
    %54 = vector.broadcast %53 : vector<32x1xf32> to vector<32x128xf32>
    %55 = vector.broadcast %cst_30 : f32 to vector<32x128xf32>
    %56 = arith.select %52, %54, %55 : vector<32x128xi1>, vector<32x128xf32>
    %57 = arith.addf %48, %56 : vector<32x128xf32>
    %c0_31 = arith.constant 0 : index
    %c5 = arith.constant 5 : index
    %58 = vector.load %arg4[%c0_31, %c5] : memref<32x8xi32, #tpu.memory_space<vmem>>, vector<32x1xi32>
    %c0_32 = arith.constant 0 : index
    %c5_33 = arith.constant 5 : index
    %59 = vector.load %arg5[%c0_32, %c5_33] : memref<32x8xf32, #tpu.memory_space<vmem>>, vector<32x1xf32>
    %60 = vector.broadcast %58 : vector<32x1xi32> to vector<32x128xi32>
    %61 = arith.cmpi eq, %60, %12 : vector<32x128xi32>
    %cst_34 = arith.constant 0.000000e+00 : f32
    %62 = vector.shape_cast %59 : vector<32x1xf32> to vector<32x1xf32>
    %63 = vector.broadcast %62 : vector<32x1xf32> to vector<32x128xf32>
    %64 = vector.broadcast %cst_34 : f32 to vector<32x128xf32>
    %65 = arith.select %61, %63, %64 : vector<32x128xi1>, vector<32x128xf32>
    %66 = arith.addf %57, %65 : vector<32x128xf32>
    %c0_35 = arith.constant 0 : index
    %c6 = arith.constant 6 : index
    %67 = vector.load %arg4[%c0_35, %c6] : memref<32x8xi32, #tpu.memory_space<vmem>>, vector<32x1xi32>
    %c0_36 = arith.constant 0 : index
    %c6_37 = arith.constant 6 : index
    %68 = vector.load %arg5[%c0_36, %c6_37] : memref<32x8xf32, #tpu.memory_space<vmem>>, vector<32x1xf32>
    %69 = vector.broadcast %67 : vector<32x1xi32> to vector<32x128xi32>
    %70 = arith.cmpi eq, %69, %12 : vector<32x128xi32>
    %cst_38 = arith.constant 0.000000e+00 : f32
    %71 = vector.shape_cast %68 : vector<32x1xf32> to vector<32x1xf32>
    %72 = vector.broadcast %71 : vector<32x1xf32> to vector<32x128xf32>
    %73 = vector.broadcast %cst_38 : f32 to vector<32x128xf32>
    %74 = arith.select %70, %72, %73 : vector<32x128xi1>, vector<32x128xf32>
    %75 = arith.addf %66, %74 : vector<32x128xf32>
    %c0_39 = arith.constant 0 : index
    %c7 = arith.constant 7 : index
    %76 = vector.load %arg4[%c0_39, %c7] : memref<32x8xi32, #tpu.memory_space<vmem>>, vector<32x1xi32>
    %c0_40 = arith.constant 0 : index
    %c7_41 = arith.constant 7 : index
    %77 = vector.load %arg5[%c0_40, %c7_41] : memref<32x8xf32, #tpu.memory_space<vmem>>, vector<32x1xf32>
    %78 = vector.broadcast %76 : vector<32x1xi32> to vector<32x128xi32>
    %79 = arith.cmpi eq, %78, %12 : vector<32x128xi32>
    %cst_42 = arith.constant 0.000000e+00 : f32
    %80 = vector.shape_cast %77 : vector<32x1xf32> to vector<32x1xf32>
    %81 = vector.broadcast %80 : vector<32x1xf32> to vector<32x128xf32>
    %82 = vector.broadcast %cst_42 : f32 to vector<32x128xf32>
    %83 = arith.select %79, %81, %82 : vector<32x128xi1>, vector<32x128xf32>
    %84 = arith.addf %75, %83 : vector<32x128xf32>
    %cst_43 = arith.constant dense<0xFF800000> : vector<32xf32>
    %85 = vector.multi_reduction <maximumf>, %84, %cst_43 [1] : vector<32x128xf32> to vector<32xf32>
    %86 = vector.shape_cast %85 : vector<32xf32> to vector<32x1xf32>
    %87 = vector.broadcast %86 : vector<32x1xf32> to vector<32x128xf32>
    %88 = arith.subf %84, %87 : vector<32x128xf32>
    %89 = math.exp %88 : vector<32x128xf32>
    %cst_44 = arith.constant dense<0.000000e+00> : vector<32xf32>
    %90 = vector.multi_reduction <add>, %89, %cst_44 [1] : vector<32x128xf32> to vector<32xf32>
    %91 = vector.shape_cast %90 : vector<32xf32> to vector<32x1xf32>
    %92 = tpu.reciprocal %91 {approx = true} : vector<32x1xf32> -> vector<32x1xf32>
    %93 = arith.mulf %91, %92 : vector<32x1xf32>
    %cst_45 = arith.constant 2.000000e+00 : f32
    %94 = vector.broadcast %cst_45 : f32 to vector<32x1xf32>
    %95 = arith.subf %94, %93 : vector<32x1xf32>
    %96 = arith.mulf %92, %95 : vector<32x1xf32>
    %97 = vector.broadcast %96 : vector<32x1xf32> to vector<32x128xf32>
    %98 = arith.mulf %89, %97 : vector<32x128xf32>
    %c0_46 = arith.constant 0 : index
    %c0_47 = arith.constant 0 : index
    %99 = vector.load %arg7[%c0_46, %c0_47] : memref<32x128xf32, #tpu.memory_space<vmem>>, vector<32x128xf32>
    tpu.vector_store %arg7[%c0_46, %c0_47], %98 {strides = array<i32>} : memref<32x128xf32, #tpu.memory_space<vmem>>, vector<32x128xf32>,
    return
  }
  func.func @transform_0(%arg0: i32) -> (i32, i32) {
    %c0_i32 = arith.constant 0 : i32
    %c0_i32_0 = arith.constant 0 : i32
    return %arg0, %c0_i32 : i32, i32
  }
  func.func @transform_1(%arg0: i32) -> (i32, i32) {
    %c0_i32 = arith.constant 0 : i32
    %c0_i32_0 = arith.constant 0 : i32
    %c0_i32_1 = arith.constant 0 : i32
    return %c0_i32, %c0_i32_0 : i32, i32
  }
  func.func @transform_2(%arg0: i32) -> (i32, i32) {
    %c0_i32 = arith.constant 0 : i32
    %c0_i32_0 = arith.constant 0 : i32
    %c0_i32_1 = arith.constant 0 : i32
    return %c0_i32, %c0_i32_0 : i32, i32
  }
  func.func @transform_3(%arg0: i32) -> (i32, i32) {
    %c0_i32 = arith.constant 0 : i32
    %c0_i32_0 = arith.constant 0 : i32
    return %arg0, %c0_i32 : i32, i32
  }
  func.func @transform_4(%arg0: i32) -> (i32, i32) {
    %c0_i32 = arith.constant 0 : i32
    %c0_i32_0 = arith.constant 0 : i32
    return %arg0, %c0_i32 : i32, i32
  }
  func.func @transform_5(%arg0: i32) -> (i32, i32) {
    %c0_i32 = arith.constant 0 : i32
    %c0_i32_0 = arith.constant 0 : i32
    return %arg0, %c0_i32 : i32, i32
  }
  func.func @transform_6(%arg0: i32) -> (i32, i32) {
    %c0_i32 = arith.constant 0 : i32
    %c0_i32_0 = arith.constant 0 : i32
    return %arg0, %c0_i32 : i32, i32
  }
  func.func @transform_7(%arg0: i32) -> (i32, i32) {
    %c0_i32 = arith.constant 0 : i32
    %c0_i32_0 = arith.constant 0 : i32
    return %arg0, %c0_i32 : i32, i32
  }
}

</mosaic_0001>

<bundles_post_ra>
// kernel: tpu_custom_call.1
= control target key start
LH: loop header
LB: loop body
LE: loop exit
PB: predicated region body
PF: predicated region fallthrough
CT: control target
= control target key end

     0   :  { %13 = vsyncpa [#allocation3], 0  ;;  %v660_v3 = vmov 0   ;;  %s898_s0 = inlined_call_operand.vmem [shape: bf16[32,32], index: 0, kind: input, shape index: {}]   ;;  %s899_s1 = inlined_call_operand.vmem [shape: bf16[32,128], index: 1, kind: input, shape index: {}]   ;;  %s900_s2 = inlined_call_operand.vmem [shape: f32[1,128], index: 2, kind: input, shape index: {}]   ;;  %s901_s3 = inlined_call_operand.vmem [shape: s32[32,8], index: 3, kind: input, shape index: {}]   ;;  %s902_s4 = inlined_call_operand.vmem [shape: f32[32,8], index: 4, kind: input, shape index: {}]   ;;  %s903_s5 = inlined_call_operand.vmem [shape: s8[32,128], index: 5, kind: input, shape index: {}]   ;;  %s904_s6 = inlined_call_operand.hbm [shape: f32[32,128], index: 6, kind: output, shape index: {0}]   ;;  %s905_s7 = inlined_call_operand.hbm [shape: f32[32,128], index: 7, kind: output, shape index: {1}]  }
   0x1   :  { %v715_v0 = vld [vmem:[%s902_s4] sm:$0xff]  ;;  %v720_v1 = vld [vmem:[%s901_s3 + $0x10] sm:$0xff]  ;;  %569 = vset.pattern.permute.xlu2 %v660_v3  ;;  %568 = vset.pattern.permute.xlu1 %v660_v3  ;;  %v552_v4 = vld [vmem:[%s899_s1 + $0x8] sm:$0xff] }
   0x2   :  { %v725_v2 = vld [vmem:[%s901_s3] sm:$0xff]  ;;  %567 = vset.pattern.permute.xlu0 %v660_v3  ;;  %137 = vperm.xlu2 %569, %v715_v0  }
   0x3   :  { %126 = vperm.xlu1 %568, %v720_v1   ;;  %120 = vperm.xlu0 %567, %v725_v2   ;;  %v551_v5 = vld [vmem:[%s899_s1] sm:$0xff] }
   0x4   :  { %75 = vmatpush.bf16.msra.mxu0 %v552_v4  ;;  %553 = vmatpush.bf16.msra.mxu1 %v552_v4 }
   0x5   :  { %14 = vsyncpa [#allocation5], 0  ;;  %v739_v6 = vld [vmem:[%s902_s4 + $0x8] sm:$0xff]  ;;  %v744_v7 = vld [vmem:[%s901_s3 + $0x18] sm:$0xff]  ;;  %vm62_vm0 = vcmask 261120   ;;  %v661_v13 = vmov 1   ;;  %v109_v21 = vlaneseq }
   0x6   :  { %v749_v8 = vld [vmem:[%s901_s3 + $0x8] sm:$0xff]  ;;  %v549_v9 = vld [vmem:[%s898_s0] sm:$0xff]  ;;  %v763_v11 = vld [vmem:[%s902_s4 + $0x18] sm:$0xff]  ;;  %v662_v14 = vmov 2   ;;  %v663_v15 = vmov 3   ;;  %v664_v16 = vmov 4  }
   0x7   :  { %v550_v10 = vld [vmem:[%s898_s0 + $0x8] sm:$0xff]  ;;  %v768_v12 = vld [vmem:[%s902_s4 + $0x10] sm:$0xff]  ;;  %v665_v18 = vmov 5   ;;  %v666_v22 = vmov 6   ;;  %v809_v23 = vand.u32 127, %v109_v21  ;;  %v88_v30 = vld [vmem:[%s903_s5] sm:$0xff] }
   0x8   :  { %76 = vmatpush.bf16.msra.mxu0 %v551_v5  ;;  %554 = vmatpush.bf16.msra.mxu1 %v551_v5  ;;  %v89_v33 = vunpack.c.0.s8 %v88_v30  ;;  %v91_v34 = vunpack.c.2.s8 %v88_v30  ;;  %v667_v35 = vmov 7   ;;  %v591_v42 = vld [vmem:[%s900_s2] ss:$0 sm:$0xff]  ;;  %v90_v44 = vunpack.c.1.s8 %v88_v30  ;;  %s668_s2 = smov [#allocation4]   ;;  %s514_s27 = sshll.u32 %s905_s7, 4  ;;  %s515_s27 = int_to_ptr.hbm [resolvable:$true] %s514_s27 }
   0x9   :  { %v92_v45 = vunpack.c.3.s8 %v88_v30  ;;  %s512_s24 = sshll.u32 %s668_s2, 4  ;;  %s669_s28 = smov 128   ;;  %s513_s24 = int_to_ptr.vmem [resolvable:$true] %s512_s24 }
   0xa   :  { %142 = vperm.xlu2 %569, %v739_v6   ;;  %v93_v36 = vcvt.s32.f32 %v89_v33  ;;  %v95_v37 = vcvt.s32.f32 %v91_v34  ;;  %v94_v52 = vcvt.s32.f32 %v90_v44  ;;  %s670_s29 = smov 8   ;;  %s671_s7 = smov [#allocation2]  }
   0xb   :  { %129 = vperm.xlu1 %568, %v744_v7   ;;  %123 = vperm.xlu0 %567, %v749_v8   ;;  %v96_v53 = vcvt.s32.f32 %v92_v45  ;;  %s499_s30 = sshll.u32 %s671_s7, 4  ;;  %s501_s10 = sshll.u32 %s904_s6, 4  ;;  %s500_s30 = int_to_ptr.vmem [resolvable:$true] %s499_s30  ;;  %s502_s10 = int_to_ptr.hbm [resolvable:$true] %s501_s10 }
   0xc   :  { %547 = vmatmul.msk.bf16.vlgmr.msra.gmra.mxu0 %vm62_vm0, %v549_v9  ;;  %548 = vmatmul.msk.bf16.vlgmr.msra.gmra.mxu1 %vm62_vm0, %v550_v10  ;;  %v97_v46 = vmul.f32 -1000000.0, %v93_v36  ;;  %v99_v47 = vmul.f32 -1000000.0, %v95_v37  ;;  %v98_v61 = vmul.f32 -1000000.0, %v94_v52 }
   0xd   :  { %v100_v62 = vmul.f32 -1000000.0, %v96_v53 }
  0x12   :  { %570 = vset.pattern.permute.xlu2 %v661_v13 }
  0x13   :  { %152 = vperm.xlu1 %568, %v763_v11   ;;  %147 = vperm.xlu0 %567, %v768_v12  }
  0x14   :  { %164 = vperm.xlu2 %570, %v725_v2  }
  0x1b   :  { %572 = vset.pattern.permute.xlu1 %v661_v13  ;;  %571 = vset.pattern.permute.xlu0 %v661_v13 }
  0x1c   :  { %170 = vperm.xlu1 %572, %v720_v1   ;;  %173 = vperm.xlu2 %570, %v744_v7  }
  0x1d   :  { %167 = vperm.xlu0 %571, %v749_v8  }
  0x24   :  { %180 = vperm.xlu1 %572, %v715_v0   ;;  %184 = vperm.xlu2 %570, %v739_v6  }
  0x25   :  { %188 = vperm.xlu0 %571, %v768_v12  }
  0x2c   :  { %192 = vperm.xlu1 %572, %v763_v11   ;;  %573 = vset.pattern.permute.xlu2 %v662_v14 }
  0x2d   :  { %574 = vset.pattern.permute.xlu0 %v662_v14  ;;  %204 = vperm.xlu2 %573, %v725_v2  }
  0x2e   :  { %207 = vperm.xlu0 %574, %v749_v8  }
  0x34   :  { %575 = vset.pattern.permute.xlu1 %v662_v14 }
  0x35   :  { %210 = vperm.xlu1 %575, %v720_v1   ;;  %213 = vperm.xlu2 %573, %v744_v7  }
  0x36   :  { %228 = vperm.xlu0 %574, %v768_v12  }
  0x3d   :  { %220 = vperm.xlu1 %575, %v715_v0   ;;  %224 = vperm.xlu2 %573, %v739_v6  }
  0x3e   :  { %577 = vset.pattern.permute.xlu0 %v663_v15 }
  0x3f   :  { %247 = vperm.xlu0 %577, %v749_v8  }
  0x45   :  { %232 = vperm.xlu1 %575, %v763_v11   ;;  %576 = vset.pattern.permute.xlu2 %v663_v15 }
  0x46   :  { %244 = vperm.xlu2 %576, %v725_v2  }
  0x47   :  { %268 = vperm.xlu0 %577, %v768_v12  }
  0x4d   :  { %578 = vset.pattern.permute.xlu1 %v663_v15 }
  0x4e   :  { %250 = vperm.xlu1 %578, %v720_v1   ;;  %253 = vperm.xlu2 %576, %v744_v7  }
  0x4f   :  { %580 = vset.pattern.permute.xlu0 %v664_v16 }
  0x50   :  { %287 = vperm.xlu0 %580, %v749_v8  }
  0x56   :  { %260 = vperm.xlu1 %578, %v715_v0   ;;  %264 = vperm.xlu2 %576, %v739_v6  }
  0x58   :  { %308 = vperm.xlu0 %580, %v768_v12  }
  0x5c   :  { %v138_v17 = vpop.permute.xlu2 %137 }
  0x5e   :  { %272 = vperm.xlu1 %578, %v763_v11   ;;  %579 = vset.pattern.permute.xlu2 %v664_v16 }
  0x5f   :  { %284 = vperm.xlu2 %579, %v725_v2  }
  0x60   :  { %583 = vset.pattern.permute.xlu0 %v665_v18 }
  0x61   :  { %327 = vperm.xlu0 %583, %v749_v8  }
  0x64   :  { %v143_v19 = vpop.permute.xlu2 %142 }
  0x66   :  { %581 = vset.pattern.permute.xlu1 %v664_v16 }
  0x67   :  { %290 = vperm.xlu1 %581, %v720_v1   ;;  %293 = vperm.xlu2 %579, %v744_v7  }
  0x69   :  { %348 = vperm.xlu0 %583, %v768_v12  }
  0x6e   :  { %v803_v20 = vpop.permute.xlu2 %164 }
  0x6f   :  { %300 = vperm.xlu1 %581, %v715_v0   ;;  %304 = vperm.xlu2 %579, %v739_v6   ;;  %vm175_vm6 = vcmp.eq.s32.totalorder %v803_v20, %v809_v23 }
  0x71   :  { %586 = vset.pattern.permute.xlu0 %v666_v22 }
  0x72   :  { %367 = vperm.xlu0 %586, %v749_v8  }
  0x75   :  { %v127_v24 = vpop.permute.xlu1 %126  ;;  %v121_v25 = vpop.permute.xlu0 %120 }
  0x76   :  { %vm131_vm1 = vcmp.eq.s32.totalorder %v121_v25, %v809_v23  ;;  %v812_v26 = vpop.permute.xlu2 %173  ;;  %vm133_vm3 = vcmp.eq.s32.totalorder %v127_v24, %v809_v23 }
  0x77   :  { %v155_v27 = vsel %vm131_vm1, %v138_v17, 0.0  ;;  %312 = vperm.xlu1 %581, %v763_v11   ;;  %582 = vset.pattern.permute.xlu2 %v665_v18  ;;  %vm178_vm8 = vcmp.eq.s32.totalorder %v812_v26, %v809_v23 }
  0x78   :  { %324 = vperm.xlu2 %582, %v725_v2  }
  0x7a   :  { %388 = vperm.xlu0 %586, %v768_v12  }
  0x7d   :  { %v130_v28 = vpop.permute.xlu1 %129  ;;  %v124_v29 = vpop.permute.xlu0 %123 }
  0x7e   :  { %vm132_vm2 = vcmp.eq.s32.totalorder %v124_v29, %v809_v23  ;;  %v185_v31 = vpop.permute.xlu2 %184  ;;  %vm134_vm4 = vcmp.eq.s32.totalorder %v130_v28, %v809_v23 }
  0x7f   :  { %v156_v32 = vsel %vm132_vm2, %v143_v19, 0.0  ;;  %584 = vset.pattern.permute.xlu1 %v665_v18 }
  0x80   :  { %330 = vperm.xlu1 %584, %v720_v1   ;;  %333 = vperm.xlu2 %582, %v744_v7  }
  0x82   :  { %589 = vset.pattern.permute.xlu0 %v667_v35 }
  0x83   :  { %407 = vperm.xlu0 %589, %v749_v8  }
  0x85   :  { %v153_v38 = vpop.permute.xlu1 %152  ;;  %v148_v39 = vpop.permute.xlu0 %147 }
  0x86   :  { %v158_v40 = vsel %vm134_vm4, %v153_v38, 0.0  ;;  %v157_v41 = vsel %vm133_vm3, %v148_v39, 0.0 }
  0x87   :  { %v830_v43 = vpop.permute.xlu2 %204 }
  0x88   :  { %340 = vperm.xlu1 %584, %v715_v0   ;;  %344 = vperm.xlu2 %582, %v739_v6   ;;  %vm215_vm11 = vcmp.eq.s32.totalorder %v830_v43, %v809_v23 }
  0x89   :  { %v78_v48 = vpop.f32.mrf.mxu0  ;;  %v83_v49 = vpop.f32.mrf.mxu1 }
  0x8a   :  { %v79_v50 = vadd.f32 %v591_v42, %v78_v48  ;;  %v84_v51 = vadd.f32 %v591_v42, %v83_v49 }
  0x8b   :  { %428 = vperm.xlu0 %589, %v768_v12  }
  0x8c   :  { %v101_v54 = vadd.f32 %v97_v46, %v79_v50  ;;  %v159_v55 = vadd.f32 %v155_v27, %v79_v50  ;;  %v103_v56 = vadd.f32 %v99_v47, %v84_v51  ;;  %v161_v57 = vadd.f32 %v157_v41, %v84_v51 }
  0x8e   :  { %105 = vst [vmem:[#allocation4] sm:$0xff] %v101_v54  ;;  %v171_v58 = vpop.permute.xlu1 %170 }
  0x8f   :  { %107 = vst [vmem:[#allocation4 + $0x10] sm:$0xff] %v103_v56  ;;  %v168_v59 = vpop.permute.xlu0 %167  ;;  %v835_v60 = vpop.permute.xlu2 %213  ;;  %vm177_vm7 = vcmp.eq.s32.totalorder %v171_v58, %v809_v23 }
  0x90   :  { %vm176_vm5 = vcmp.eq.s32.totalorder %v168_v59, %v809_v23  ;;  %352 = vperm.xlu1 %584, %v763_v11   ;;  %585 = vset.pattern.permute.xlu2 %v666_v22  ;;  %vm218_vm13 = vcmp.eq.s32.totalorder %v835_v60, %v809_v23 }
  0x91   :  { %v196_v63 = vsel %vm176_vm5, %v185_v31, 0.0  ;;  %v80_v3 = vpop.f32.mrf.mxu0  ;;  %v85_v4 = vpop.f32.mrf.mxu1  ;;  %364 = vperm.xlu2 %585, %v725_v2  }
  0x92   :  { %v81_v5 = vadd.f32 %v591_v42, %v80_v3  ;;  %v86_v8 = vadd.f32 %v591_v42, %v85_v4 }
  0x94   :  { %v102_v9 = vadd.f32 %v98_v61, %v81_v5  ;;  %v160_v10 = vadd.f32 %v156_v32, %v81_v5  ;;  %v104_v12 = vadd.f32 %v100_v62, %v86_v8  ;;  %v162_v13 = vadd.f32 %v158_v40, %v86_v8 }
  0x96   :  { %106 = vst [vmem:[#allocation4 + $0x8] sm:$0xff] %v102_v9  ;;  %v181_v14 = vpop.permute.xlu1 %180  ;;  %v200_v15 = vadd.f32 %v196_v63, %v160_v10 }
  0x97   :  { %108 = vst [vmem:[#allocation4 + $0x18] sm:$0xff] %v104_v12  ;;  %v195_v16 = vsel %vm175_vm6, %v181_v14, 0.0  ;;  %v189_v17 = vpop.permute.xlu0 %188  ;;  %v225_v18 = vpop.permute.xlu2 %224 }
  0x98   :  { %v199_v19 = vadd.f32 %v195_v16, %v159_v55  ;;  %v197_v21 = vsel %vm177_vm7, %v189_v17, 0.0  ;;  %587 = vset.pattern.permute.xlu1 %v666_v22  ;;  %520 = dma.vmem_to_hbm [thread:$0]  %s513_s24, 512, %s515_s27, [#allocation5], %s669_s28, %s669_s28, %s670_s29  }
  0x99   :  { %v201_v24 = vadd.f32 %v197_v21, %v161_v57  ;;  %370 = vperm.xlu1 %587, %v720_v1   ;;  %373 = vperm.xlu2 %585, %v744_v7  }
  0x9e   :  { %v193_v20 = vpop.permute.xlu1 %192 }
  0x9f   :  { %v198_v25 = vsel %vm178_vm8, %v193_v20, 0.0 }
  0xa0   :  { %v202_v27 = vadd.f32 %v198_v25, %v162_v13  ;;  %v208_v28 = vpop.permute.xlu0 %207  ;;  %v245_v29 = vpop.permute.xlu2 %244 }
  0xa1   :  { %vm216_vm9 = vcmp.eq.s32.totalorder %v208_v28, %v809_v23  ;;  %380 = vperm.xlu1 %587, %v715_v0   ;;  %384 = vperm.xlu2 %585, %v739_v6   ;;  %vm255_vm0 = vcmp.eq.s32.totalorder %v245_v29, %v809_v23 }
  0xa2   :  { %v236_v22 = vsel %vm216_vm9, %v225_v18, 0.0 }
  0xa3   :  { %v240_v30 = vadd.f32 %v236_v22, %v200_v15 }
  0xa7   :  { %v211_v31 = vpop.permute.xlu1 %210 }
  0xa8   :  { %vm217_vm10 = vcmp.eq.s32.totalorder %v211_v31, %v809_v23  ;;  %v229_v32 = vpop.permute.xlu0 %228  ;;  %v254_v33 = vpop.permute.xlu2 %253 }
  0xa9   :  { %v237_v34 = vsel %vm217_vm10, %v229_v32, 0.0  ;;  %392 = vperm.xlu1 %587, %v763_v11   ;;  %588 = vset.pattern.permute.xlu2 %v667_v35  ;;  %vm258_vm1 = vcmp.eq.s32.totalorder %v254_v33, %v809_v23 }
  0xaa   :  { %v241_v26 = vadd.f32 %v237_v34, %v201_v24  ;;  %404 = vperm.xlu2 %588, %v725_v2  }
  0xaf   :  { %v221_v36 = vpop.permute.xlu1 %220 }
  0xb0   :  { %v235_v37 = vsel %vm215_vm11, %v221_v36, 0.0  ;;  %v265_v38 = vpop.permute.xlu2 %264 }
  0xb1   :  { %v239_v39 = vadd.f32 %v235_v37, %v199_v19  ;;  %v248_v40 = vpop.permute.xlu0 %247  ;;  %590 = vset.pattern.permute.xlu1 %v667_v35 }
  0xb2   :  { %vm256_vm12 = vcmp.eq.s32.totalorder %v248_v40, %v809_v23  ;;  %410 = vperm.xlu1 %590, %v720_v1   ;;  %413 = vperm.xlu2 %588, %v744_v7  }
  0xb3   :  { %v276_v41 = vsel %vm256_vm12, %v265_v38, 0.0 }
  0xb4   :  { %v280_v42 = vadd.f32 %v276_v41, %v240_v30 }
  0xb7   :  { %v233_v2 = vpop.permute.xlu1 %232 }
  0xb8   :  { %v238_v43 = vsel %vm218_vm13, %v233_v2, 0.0 }
  0xb9   :  { %v242_v44 = vadd.f32 %v238_v43, %v202_v27  ;;  %v285_v45 = vpop.permute.xlu2 %284  ;;  %v269_v35 = vpop.permute.xlu0 %268 }
  0xba   :  { %420 = vperm.xlu1 %590, %v715_v0   ;;  %424 = vperm.xlu2 %588, %v739_v6   ;;  %vm295_vm3 = vcmp.eq.s32.totalorder %v285_v45, %v809_v23 }
  0xc0   :  { %v251_v46 = vpop.permute.xlu1 %250 }
  0xc1   :  { %vm257_vm14 = vcmp.eq.s32.totalorder %v251_v46, %v809_v23  ;;  %v294_v1 = vpop.permute.xlu2 %293 }
  0xc2   :  { %v277_v47 = vsel %vm257_vm14, %v269_v35, 0.0  ;;  %432 = vperm.xlu1 %590, %v763_v11   ;;  %v288_v48 = vpop.permute.xlu0 %287  ;;  %vm298_vm4 = vcmp.eq.s32.totalorder %v294_v1, %v809_v23 }
  0xc3   :  { %v281_v7 = vadd.f32 %v277_v47, %v241_v26  ;;  %vm296_vm15 = vcmp.eq.s32.totalorder %v288_v48, %v809_v23 }
  0xc8   :  { %v261_v49 = vpop.permute.xlu1 %260 }
  0xc9   :  { %v275_v50 = vsel %vm255_vm0, %v261_v49, 0.0  ;;  %v305_v51 = vpop.permute.xlu2 %304 }
  0xca   :  { %v279_v0 = vadd.f32 %v275_v50, %v239_v39  ;;  %v316_v52 = vsel %vm296_vm15, %v305_v51, 0.0  ;;  %v309_v57 = vpop.permute.xlu0 %308 }
  0xcb   :  { %v320_v6 = vadd.f32 %v316_v52, %v280_v42 }
  0xd0   :  { %v273_v53 = vpop.permute.xlu1 %272 }
  0xd1   :  { %v278_v54 = vsel %vm258_vm1, %v273_v53, 0.0 }
  0xd2   :  { %v282_v55 = vadd.f32 %v278_v54, %v242_v44  ;;  %v325_v56 = vpop.permute.xlu2 %324 }
  0xd3   :  { %v328_v8 = vpop.permute.xlu0 %327  ;;  %vm335_vm5 = vcmp.eq.s32.totalorder %v325_v56, %v809_v23 }
  0xd4   :  { %vm336_vm7 = vcmp.eq.s32.totalorder %v328_v8, %v809_v23 }
  0xd9   :  { %v291_v11 = vpop.permute.xlu1 %290 }
  0xda   :  { %vm297_vm2 = vcmp.eq.s32.totalorder %v291_v11, %v809_v23  ;;  %v334_v58 = vpop.permute.xlu2 %333 }
  0xdb   :  { %v317_v59 = vsel %vm297_vm2, %v309_v57, 0.0  ;;  %v349_v13 = vpop.permute.xlu0 %348  ;;  %vm338_vm6 = vcmp.eq.s32.totalorder %v334_v58, %v809_v23 }
  0xdc   :  { %v321_v60 = vadd.f32 %v317_v59, %v281_v7 }
  0xe1   :  { %v301_v61 = vpop.permute.xlu1 %300 }
  0xe2   :  { %v315_v62 = vsel %vm295_vm3, %v301_v61, 0.0  ;;  %v345_v63 = vpop.permute.xlu2 %344 }
  0xe3   :  { %v319_v3 = vadd.f32 %v315_v62, %v279_v0  ;;  %v356_v22 = vsel %vm336_vm7, %v345_v63, 0.0 }
  0xe4   :  { %v368_v19 = vpop.permute.xlu0 %367  ;;  %v360_v32 = vadd.f32 %v356_v22, %v320_v6 }
  0xe5   :  { %vm376_vm8 = vcmp.eq.s32.totalorder %v368_v19, %v809_v23 }
  0xe9   :  { %v313_v4 = vpop.permute.xlu1 %312 }
  0xea   :  { %v318_v5 = vsel %vm298_vm4, %v313_v4, 0.0 }
  0xeb   :  { %v322_v9 = vadd.f32 %v318_v5, %v282_v55  ;;  %v365_v10 = vpop.permute.xlu2 %364 }
  0xec   :  { %v389_v27 = vpop.permute.xlu0 %388  ;;  %vm375_vm13 = vcmp.eq.s32.totalorder %v365_v10, %v809_v23 }
  0xf2   :  { %v331_v12 = vpop.permute.xlu1 %330 }
  0xf3   :  { %v374_v14 = vpop.permute.xlu2 %373  ;;  %vm337_vm10 = vcmp.eq.s32.totalorder %v331_v12, %v809_v23 }
  0xf4   :  { %v357_v39 = vsel %vm337_vm10, %v349_v13, 0.0  ;;  %vm378_vm15 = vcmp.eq.s32.totalorder %v374_v14, %v809_v23 }
  0xf5   :  { %v408_v30 = vpop.permute.xlu0 %407  ;;  %v361_v41 = vadd.f32 %v357_v39, %v321_v60 }
  0xf6   :  { %vm416_vm9 = vcmp.eq.s32.totalorder %v408_v30, %v809_v23 }
  0xfa   :  { %v341_v15 = vpop.permute.xlu1 %340 }
  0xfb   :  { %v355_v16 = vsel %vm335_vm5, %v341_v15, 0.0  ;;  %v385_v17 = vpop.permute.xlu2 %384 }
  0xfc   :  { %v359_v18 = vadd.f32 %v355_v16, %v319_v3  ;;  %v396_v31 = vsel %vm376_vm8, %v385_v17, 0.0 }
  0xfd   :  { %v400_v34 = vadd.f32 %v396_v31, %v360_v32  ;;  %v429_v42 = vpop.permute.xlu0 %428 }
 0x102   :  { %v353_v21 = vpop.permute.xlu1 %352 }
 0x103   :  { %v358_v24 = vsel %vm338_vm6, %v353_v21, 0.0 }
 0x104   :  { %v362_v20 = vadd.f32 %v358_v24, %v322_v9  ;;  %v405_v25 = vpop.permute.xlu2 %404 }
 0x105   :  { %vm415_vm14 = vcmp.eq.s32.totalorder %v405_v25, %v809_v23 }
 0x10b   :  { %v371_v28 = vpop.permute.xlu1 %370 }
 0x10c   :  { %v414_v29 = vpop.permute.xlu2 %413  ;;  %vm377_vm11 = vcmp.eq.s32.totalorder %v371_v28, %v809_v23 }
 0x10d   :  { %v397_v40 = vsel %vm377_vm11, %v389_v27, 0.0  ;;  %vm418_vm0 = vcmp.eq.s32.totalorder %v414_v29, %v809_v23 }
 0x10e   :  { %v401_v43 = vadd.f32 %v397_v40, %v361_v41 }
 0x113   :  { %v381_v33 = vpop.permute.xlu1 %380 }
 0x114   :  { %v425_v26 = vpop.permute.xlu2 %424  ;;  %v395_v35 = vsel %vm375_vm13, %v381_v33, 0.0 }
 0x115   :  { %v436_v36 = vsel %vm416_vm9, %v425_v26, 0.0  ;;  %v399_v46 = vadd.f32 %v395_v35, %v359_v18 }
 0x116   :  { %v440_v37 = vadd.f32 %v436_v36, %v400_v34 }
 0x118   :  { %445 = vmax.xlane.f32.xlu0 %v440_v37 }
 0x11b   :  { %v393_v38 = vpop.permute.xlu1 %392 }
 0x11c   :  { %v398_v48 = vsel %vm378_vm15, %v393_v38, 0.0 }
 0x11d   :  { %v402_v49 = vadd.f32 %v398_v48, %v362_v20 }
 0x124   :  { %v411_v2 = vpop.permute.xlu1 %410 }
 0x125   :  { %vm417_vm12 = vcmp.eq.s32.totalorder %v411_v2, %v809_v23 }
 0x126   :  { %v437_v44 = vsel %vm417_vm12, %v429_v42, 0.0 }
 0x127   :  { %v441_v45 = vadd.f32 %v437_v44, %v401_v43 }
 0x129   :  { %447 = vmax.xlane.f32.xlu1 %v441_v45 }
 0x12c   :  { %v421_v1 = vpop.permute.xlu1 %420 }
 0x12d   :  { %v435_v47 = vsel %vm415_vm14, %v421_v1, 0.0 }
 0x12e   :  { %v439_v7 = vadd.f32 %v435_v47, %v399_v46 }
 0x130   :  { %443 = vmax.xlane.f32.xlu2 %v439_v7 }
 0x134   :  { %v433_v50 = vpop.permute.xlu1 %432 }
 0x135   :  { %v438_v51 = vsel %vm418_vm0, %v433_v50, 0.0 }
 0x136   :  { %v442_v0 = vadd.f32 %v438_v51, %v402_v49 }
 0x138   :  { %449 = vmax.xlane.f32.xlu2 %v442_v0 }
 0x18b   :  { %v446_v52 = vpop.xlane.xlu0 %445 }
 0x18c   :  { %v452_v6 = vsub.f32 %v440_v37, %v446_v52 }
 0x18e   :  { %v457_v53 = vmul.f32 1.442695, %v452_v6 }
 0x190   :  { %592 = vpow2.f32 %v457_v53 }
 0x196   :  { %v593_v54 = vpop.eup %592 }
 0x197   :  { %465 = vadd.xlane.f32.xlu0 %v593_v54 }
 0x19c   :  { %v448_v55 = vpop.xlane.xlu1 %447 }
 0x19d   :  { %v453_v56 = vsub.f32 %v441_v45, %v448_v55 }
 0x19f   :  { %v459_v57 = vmul.f32 1.442695, %v453_v56 }
 0x1a1   :  { %594 = vpow2.f32 %v459_v57 }
 0x1a3   :  { %v444_v11 = vpop.xlane.xlu2 %443 }
 0x1a4   :  { %v451_v58 = vsub.f32 %v439_v7, %v444_v11 }
 0x1a6   :  { %v455_v59 = vmul.f32 1.442695, %v451_v58 }
 0x1a7   :  { %v595_v60 = vpop.eup %594 }
 0x1a8   :  { %596 = vpow2.f32 %v455_v59  ;;  %467 = vadd.xlane.f32.xlu1 %v595_v60 }
 0x1ab   :  { %v450_v23 = vpop.xlane.xlu2 %449 }
 0x1ac   :  { %v454_v61 = vsub.f32 %v442_v0, %v450_v23 }
 0x1ae   :  { %v597_v62 = vpop.eup %596  ;;  %v461_v63 = vmul.f32 1.442695, %v454_v61 }
 0x1af   :  { %463 = vadd.xlane.f32.xlu2 %v597_v62 }
 0x1b0   :  { %598 = vpow2.f32 %v461_v63 }
 0x1b6   :  { %v599_v3 = vpop.eup %598 }
 0x1b7   :  { %469 = vadd.xlane.f32.xlu2 %v599_v3 }
 0x20a   :  { %v466_v4 = vpop.xlane.xlu0 %465 }
 0x20b   :  { %600 = vrcp.f32 %v466_v4 }
 0x211   :  { %v601_v5 = vpop.eup %600 }
 0x212   :  { %v476_v8 = vmul.f32 %v601_v5, %v466_v4 }
 0x214   :  { %v480_v9 = vsub.f32 2.0, %v476_v8 }
 0x216   :  { %v484_v10 = vmul.f32 %v601_v5, %v480_v9 }
 0x218   :  { %v488_v12 = vmul.f32 %v593_v54, %v484_v10 }
 0x21a   :  { %492 = vst [vmem:[#allocation2 + $0x8] sm:$0xff] %v488_v12 }
 0x21b   :  { %v468_v13 = vpop.xlane.xlu1 %467 }
 0x21c   :  { %602 = vrcp.f32 %v468_v13 }
 0x222   :  { %v603_v14 = vpop.eup %602  ;;  %v464_v15 = vpop.xlane.xlu2 %463 }
 0x223   :  { %v477_v16 = vmul.f32 %v603_v14, %v468_v13  ;;  %604 = vrcp.f32 %v464_v15 }
 0x225   :  { %v481_v17 = vsub.f32 2.0, %v477_v16 }
 0x227   :  { %v485_v18 = vmul.f32 %v603_v14, %v481_v17 }
 0x229   :  { %v605_v19 = vpop.eup %604  ;;  %v489_v21 = vmul.f32 %v595_v60, %v485_v18 }
 0x22a   :  { %v475_v24 = vmul.f32 %v605_v19, %v464_v15  ;;  %v470_v20 = vpop.xlane.xlu2 %469 }
 0x22b   :  { %493 = vst [vmem:[#allocation2 + $0x10] sm:$0xff] %v489_v21  ;;  %606 = vrcp.f32 %v470_v20 }
 0x22c   :  { %v479_v25 = vsub.f32 2.0, %v475_v24 }
 0x22e   :  { %v483_v27 = vmul.f32 %v605_v19, %v479_v25 }
 0x230   :  { %v487_v28 = vmul.f32 %v597_v62, %v483_v27 }
 0x231   :  { %v607_v29 = vpop.eup %606 }
 0x232   :  { %491 = vst [vmem:[#allocation2] sm:$0xff] %v487_v28  ;;  %v478_v22 = vmul.f32 %v607_v29, %v470_v20 }
 0x234   :  { %v482_v30 = vsub.f32 2.0, %v478_v22 }
 0x236   :  { %v486_v31 = vmul.f32 %v607_v29, %v482_v30 }
 0x238   :  { %v490_v32 = vmul.f32 %v599_v3, %v486_v31 }
 0x23a   :  { %494 = vst [vmem:[#allocation2 + $0x18] sm:$0xff] %v490_v32 }
 0x23b   :  { %507 = dma.vmem_to_hbm [thread:$0]  %s500_s30, 512, %s502_s10, [#allocation3], %s669_s28, %s669_s28, %s670_s29  }
 0x23c   :  { %656 = dma.done.wait [#allocation3], 512  }
 0x23d   :  { %657 = vsyncadd [#allocation3], 4294966784 }
 0x23e   :  { %658 = dma.done.wait [#allocation5], 512  }
 0x23f   :  { %659 = vsyncadd [#allocation5], 4294966784 }
 0x240   :  { %529 = vsyncpa [#allocation3], 1 }
 0x241   :  { %530 = vsyncpa [#allocation5], 1 }

</bundles_post_ra>
